<compile_context>
chip_gen: v7x
topology: tpu7x:2x2x1
jax: 0.10.0
libtpu: 0.0.40
codegen_flags: <defaults>
</compile_context>

<pallas_src>
import functools

import jax
import jax.numpy as jnp
from jax.experimental import pallas as pl
from jax.experimental.pallas import tpu as pltpu


def _make_hlu_kernel(alpha):
    def kernel(x_ref, o_ref):
        x = x_ref[...]
        inputs_m = jnp.minimum(x, 0)                  # == where(x < 0, x, 0)
        neg = (inputs_m * alpha) / (1.0 - inputs_m)   # denom >= 1, always safe
        o_ref[...] = jnp.where(x >= 0, x, neg)
    return kernel


@functools.partial(jax.jit, static_argnames=("alpha", "block_rows", "lane"))
def hlu(x, alpha=0.15, *, block_rows=4096, lane=128):
    """HLU activation. x: any shape, float dtype. Returns same shape/dtype."""
    orig_shape = x.shape
    n = x.size

    # Dtype-aware sublane packing: 8 rows for 4-byte, 16 for 2-byte, 32 for 1-byte.
    itemsize = jnp.dtype(x.dtype).itemsize
    sublane = max(8, 32 // itemsize)

    # Flatten into a lane-dense 2-D slab (rows, 128); pad only to the minimal
    # (sublane, lane) tile, never to a multiple of block_rows.
    rows = pl.cdiv(n, lane)
    rows_padded = pl.cdiv(rows, sublane) * sublane
    padded_size = rows_padded * lane
    needs_pad = padded_size != n

    x_flat = x.reshape(-1)
    if needs_pad:
        x_flat = jnp.pad(x_flat, (0, padded_size - n))
    x2d = x_flat.reshape(rows_padded, lane)   # pure view on the no-pad path

    # Clamp block to the data (keeps tiny inputs cheap) and to a sublane multiple.
    br = min(block_rows, rows_padded)
    br = max(sublane, (br // sublane) * sublane)

    grid = (pl.cdiv(rows_padded, br),)        # partial last block handled by Pallas

    out2d = pl.pallas_call(
        _make_hlu_kernel(float(alpha)),
        out_shape=jax.ShapeDtypeStruct((rows_padded, lane), x2d.dtype),
        grid_spec=pltpu.PrefetchScalarGridSpec(
            num_scalar_prefetch=0,
            grid=grid,
            in_specs=[pl.BlockSpec((br, lane), lambda i: (i, 0))],
            out_specs=pl.BlockSpec((br, lane), lambda i: (i, 0)),
        ),
        compiler_params=pltpu.CompilerParams(
            dimension_semantics=("parallel",),  # shards grid across TCs on v7x
        ),
    )(x2d)

    out_flat = out2d.reshape(-1)
    if needs_pad:
        out_flat = out_flat[:n]
    return out_flat.reshape(orig_shape)


def hlu_ref(x, alpha=0.15):
    """Pure-JAX reference (mirrors the PyTorch forward exactly)."""
    inputs_m = jnp.where(x < 0, x, jnp.zeros_like(x))
    return jnp.where(x >= 0.0, x, inputs_m * alpha / (1 - inputs_m))


if __name__ == "__main__":
    key = jax.random.PRNGKey(0)

    # Small NCHW input consistent with the module's usage in a CNN.
    # size = 2048 -> exact (16, 128) reshape, zero-copy (no pad / no slice) path.
    x = jax.random.normal(key, (2, 4, 16, 16), dtype=jnp.float32)
    y = jax.block_until_ready(hlu(x, alpha=0.15))
    y_ref = hlu_ref(x, alpha=0.15)
    assert y.shape == x.shape and y.dtype == x.dtype
    assert jnp.allclose(y, y_ref, atol=1e-6, rtol=1e-6), "mismatch vs reference"

    # Awkward shape to exercise the minimal-padding / partial-block path.
    x2 = jax.random.normal(jax.random.PRNGKey(1), (3, 5, 7, 11), dtype=jnp.float32)
    y2 = jax.block_until_ready(hlu(x2, alpha=0.15))
    assert jnp.allclose(y2, hlu_ref(x2, alpha=0.15), atol=1e-6, rtol=1e-6), \
        "mismatch vs reference (padded path)"

    print("KERNEL_OK")
</pallas_src>

<mosaic_0001>
module attributes {stable_mosaic.version = 11 : i64} {
  func.func @kernel(%arg0: i32, %arg1: memref<16x128xf32, #tpu.memory_space<vmem>>, %arg2: memref<16x128xf32, #tpu.memory_space<vmem>>) attributes {dimension_semantics = [#tpu.dimension_semantics<parallel>], iteration_bounds = array<i64: 1>, scalar_prefetch = 0 : i64, scratch_operands = 0 : i64, tpu.core_type = #tpu.core_type<tc>, window_params = [{transform_indices = @transform_0, window_bounds = array<i64: 16, 128>}, {transform_indices = @transform_1, window_bounds = array<i64: 16, 128>}]} {
    %c0 = arith.constant 0 : index
    %c0_0 = arith.constant 0 : index
    %0 = vector.load %arg1[%c0, %c0_0] : memref<16x128xf32, #tpu.memory_space<vmem>>, vector<16x128xf32>
    %cst = arith.constant 0.000000e+00 : f32
    %1 = vector.broadcast %cst : f32 to vector<16x128xf32>
    %2 = arith.minimumf %0, %1 : vector<16x128xf32>
    %cst_1 = arith.constant 1.500000e-01 : f32
    %3 = vector.broadcast %cst_1 : f32 to vector<16x128xf32>
    %4 = arith.mulf %2, %3 : vector<16x128xf32>
    %cst_2 = arith.constant 1.000000e+00 : f32
    %5 = vector.broadcast %cst_2 : f32 to vector<16x128xf32>
    %6 = arith.subf %5, %2 : vector<16x128xf32>
    %7 = arith.divf %4, %6 : vector<16x128xf32>
    %cst_3 = arith.constant 0.000000e+00 : f32
    %8 = vector.broadcast %cst_3 : f32 to vector<16x128xf32>
    %9 = arith.cmpf oge, %0, %8 : vector<16x128xf32>
    %10 = arith.select %9, %0, %7 : vector<16x128xi1>, vector<16x128xf32>
    %c0_4 = arith.constant 0 : index
    %c0_5 = arith.constant 0 : index
    %11 = vector.load %arg2[%c0_4, %c0_5] : memref<16x128xf32, #tpu.memory_space<vmem>>, vector<16x128xf32>
    tpu.vector_store %arg2[%c0_4, %c0_5], %10 {strides = array<i32>} : memref<16x128xf32, #tpu.memory_space<vmem>>, vector<16x128xf32>,
    return
  }
  func.func @transform_0(%arg0: i32) -> (i32, i32) {
    %c0_i32 = arith.constant 0 : i32
    %c0_i32_0 = arith.constant 0 : i32
    return %arg0, %c0_i32 : i32, i32
  }
  func.func @transform_1(%arg0: i32) -> (i32, i32) {
    %c0_i32 = arith.constant 0 : i32
    %c0_i32_0 = arith.constant 0 : i32
    return %arg0, %c0_i32 : i32, i32
  }
}

</mosaic_0001>

<bundles_post_ra>
// kernel: hlu.1
= control target key start
LH: loop header
LB: loop body
LE: loop exit
PB: predicated region body
PF: predicated region fallthrough
CT: control target
= control target key end

     0   :  { %s56_s0 = inlined_call_operand.vmem [shape: f32[16,128], index: 0, kind: input, shape index: {}]   ;;  %s57_s1 = inlined_call_operand.vmem [shape: f32[16,128], index: 1, kind: output, shape index: {}]  }
   0x1   :  { %v8_v0 = vld [vmem:[%s56_s0] sm:$0xff]  ;;  %v9_v1 = vld [vmem:[%s56_s0 + $0x8] sm:$0xff] }
   0x2   :  { %v10_v2 = vmin.f32 %v8_v0, 0.0  ;;  %v11_v3 = vmin.f32 %v9_v1, 0.0  ;;  %vm20_vm0 = vcmp.ge.f32.partialorder %v8_v0, 0.0  ;;  %vm21_vm1 = vcmp.ge.f32.partialorder %v9_v1, 0.0 }
   0x4   :  { %v14_v4 = vsub.f32 1.0, %v10_v2  ;;  %v15_v5 = vsub.f32 1.0, %v11_v3  ;;  %v12_v6 = vmul.f32 0.15, %v10_v2  ;;  %v13_v7 = vmul.f32 0.15, %v11_v3 }
   0x6   :  { %30 = vrcp.f32 %v14_v4 }
   0x7   :  { %32 = vrcp.f32 %v15_v5 }
  0x10   :  { %v31_v8 = vpop.eup %30 }
  0x11   :  { %v33_v9 = vpop.eup %32  ;;  %v17_v10 = vmul.f32 %v31_v8, %v12_v6 }
  0x12   :  { %v19_v11 = vmul.f32 %v33_v9, %v13_v7 }
  0x13   :  { %v22_v12 = vsel %vm20_vm0, %v8_v0, %v17_v10 }
  0x14   :  { %24 = vst [vmem:[%s57_s1] sm:$0xff] %v22_v12  ;;  %v23_v13 = vsel %vm21_vm1, %v9_v1, %v19_v11 }
  0x15   :  { %25 = vst [vmem:[%s57_s1 + $0x8] sm:$0xff] %v23_v13 }

</bundles_post_ra>
